<compile_context>
chip_gen: v5e
topology: v5e:2x2
jax: 0.10.0
libtpu: 0.0.40
codegen_flags: <defaults>
</compile_context>

<pallas_src>
import jax
import jax.numpy as jnp
from jax import lax
from jax.experimental import pallas as pl
from jax.experimental.pallas import tpu as pltpu

CONTEXT_SIZE = 2
EMBEDDING_DIM = 10
HIDDEN = 128
BATCH = 2

V_PAD = 128       # padded vocab (lane-dense logits / one-hot width per position)
MAX_TILE_B = 128  # max batch rows per grid step


def ngram_kernel(idx_ref, t_ref, b1_ref, w2t_ref, b2_ref, out_ref):
    # idx_ref : (C, TB, 1) int32  context word ids, pre-offset by c*V_PAD in wrapper
    # t_ref   : (C*Vp, H)  f32    fused Embedding @ W1^T table (resident)
    # b1_ref  : (1, H)     f32
    # w2t_ref : (H, Vp)    f32    linear2 weight, pre-transposed, padded cols = 0
    # b2_ref  : (1, Vp)    f32    padded cols = -1e30
    # out_ref : (TB, Vp)   f32    log-probs (padded cols discarded by wrapper)
    C, TB, _ = idx_ref.shape
    CVp, H = t_ref.shape

    # Single (TB, C*Vp) one-hot: per-position blocks never overlap (ids pre-offset),
    # so summing the per-position masks is exact.  One MXU matmul with K = C*Vp.
    col_ids = lax.broadcasted_iota(jnp.int32, (TB, CVp), 1)
    onehot = jnp.zeros((TB, CVp), jnp.float32)
    for c in range(C):                                              # static, C=2
        onehot = onehot + (col_ids == idx_ref[c]).astype(jnp.float32)

    h = jnp.dot(onehot, t_ref[...], preferred_element_type=jnp.float32)   # (TB, H)
    h = jnp.maximum(h + b1_ref[...], 0.0)                                  # ReLU

    logits = jnp.dot(h, w2t_ref[...],
                     preferred_element_type=jnp.float32) + b2_ref[...]     # (TB, Vp)

    # Numerically stable log_softmax over the (lane-dense) vocab axis.
    m = jnp.max(logits, axis=-1, keepdims=True)
    shifted = logits - m
    lse = jnp.log(jnp.sum(jnp.exp(shifted), axis=-1, keepdims=True))
    out_ref[...] = shifted - lse


def prepare_ngram_params(emb, w1, b1, w2, b2):
    """One-time weight prep (pad / transpose / fuse). Call at init, NOT per forward."""
    V, D = emb.shape
    H, CD = w1.shape
    C = CD // D
    assert V <= V_PAD and H == HIDDEN

    # Fuse embedding into linear1:  T[c] = emb @ W1_block_c^T, padded on the vocab
    # axis, stacked to (C*V_PAD, H).  Done in f32 HIGHEST so the fold is exact.
    w1_blocks = w1.reshape(H, C, D).transpose(1, 2, 0)                # (C, D, H)
    t = jnp.einsum('vd,cdh->cvh', emb, w1_blocks,
                   precision=lax.Precision.HIGHEST)                    # (C, V, H)
    t_p = jnp.zeros((C, V_PAD, H), jnp.float32).at[:, :V, :].set(t)
    t_p = t_p.reshape(C * V_PAD, H)                                    # (C*Vp, H)

    b1_p = b1.reshape(1, H).astype(jnp.float32)

    # linear2 weight (V, H) -> (H, Vp); padded vocab cols: weight 0, bias -1e30.
    w2t_p = jnp.zeros((H, V_PAD), jnp.float32).at[:, :V].set(w2.T)
    b2_p = jnp.full((1, V_PAD), -1e30, jnp.float32).at[0, :V].set(b2)

    return dict(t=t_p, b1=b1_p, w2t=w2t_p, b2=b2_p, C=C, V=V)


def ngram_forward(idx, params):
    B, C = idx.shape
    assert C == params['C']
    V = params['V']
    H = params['b1'].shape[1]

    # Per-call prep: only the int32 ids are padded / offset (cheap).
    tile_b = min(MAX_TILE_B, ((B + 7) // 8) * 8)
    Bp = ((B + tile_b - 1) // tile_b) * tile_b
    offs = (jnp.arange(C, dtype=jnp.int32) * V_PAD)[None, :]          # (1, C)
    idx_p = jnp.zeros((Bp, C), jnp.int32).at[:B].set(idx) + offs
    idx_k = idx_p.T.reshape(C, Bp, 1)                                  # (C, Bp, 1)

    grid = (Bp // tile_b,)
    out = pl.pallas_call(
        ngram_kernel,
        out_shape=jax.ShapeDtypeStruct((Bp, V_PAD), jnp.float32),
        grid_spec=pltpu.PrefetchScalarGridSpec(
            num_scalar_prefetch=0,
            grid=grid,
            in_specs=[
                pl.BlockSpec((C, tile_b, 1), lambda i: (0, i, 0)),     # idx tile
                pl.BlockSpec((C * V_PAD, H), lambda i: (0, 0)),        # fused table
                pl.BlockSpec((1, H), lambda i: (0, 0)),                # b1
                pl.BlockSpec((H, V_PAD), lambda i: (0, 0)),            # W2^T
                pl.BlockSpec((1, V_PAD), lambda i: (0, 0)),            # b2
            ],
            out_specs=pl.BlockSpec((tile_b, V_PAD), lambda i: (i, 0)),
        ),
        compiler_params=pltpu.CompilerParams(
            dimension_semantics=("parallel",)),
    )(idx_k, params['t'], params['b1'], params['w2t'], params['b2'])

    return out[:B, :V]


def ngram_reference(idx, emb, w1, b1, w2, b2):
    B = idx.shape[0]
    e = emb[idx]                                   # (B, C, D)
    flat = e.reshape(B, -1)                        # (B, C*D)
    h = jnp.maximum(
        jnp.dot(flat, w1.T, precision=lax.Precision.HIGHEST) + b1[None, :], 0.0)
    logits = jnp.dot(h, w2.T, precision=lax.Precision.HIGHEST) + b2[None, :]
    return jax.nn.log_softmax(logits, axis=-1)


if __name__ == "__main__":
    raw_text = ('We are about to study the idea of a computational process.\n'
                'Computational processes are abstract beings that inhabit computers.\n'
                'As they evolve, processes manipulate other abstract things called data.\n'
                'The evolution of a process is directed by a pattern of rules\n'
                'called a program. People create programs to direct processes. In effect,\n'
                'we conjure the spirits of the computer with our spells.').split()
    vocab_size = len(set(raw_text))                # 49

    key = jax.random.PRNGKey(0)
    k_idx, k_emb, k_w1, k_b1, k_w2, k_b2 = jax.random.split(key, 6)

    idx = jax.random.randint(k_idx, (BATCH, CONTEXT_SIZE), 0, vocab_size, dtype=jnp.int32)
    emb = jax.random.normal(k_emb, (vocab_size, EMBEDDING_DIM), dtype=jnp.float32)
    w1 = jax.random.normal(k_w1, (HIDDEN, CONTEXT_SIZE * EMBEDDING_DIM), dtype=jnp.float32) * 0.1
    b1 = jax.random.normal(k_b1, (HIDDEN,), dtype=jnp.float32) * 0.01
    w2 = jax.random.normal(k_w2, (vocab_size, HIDDEN), dtype=jnp.float32) * 0.1
    b2 = jax.random.normal(k_b2, (vocab_size,), dtype=jnp.float32) * 0.01

    # One-time weight prep (hoisted out of the per-call path).
    params = prepare_ngram_params(emb, w1, b1, w2, b2)
    params = jax.tree_util.tree_map(
        lambda x: jax.block_until_ready(x) if isinstance(x, jax.Array) else x, params)

    out = ngram_forward(idx, params)
    out = jax.block_until_ready(out)

    ref = ngram_reference(idx, emb, w1, b1, w2, b2)
    assert out.shape == (BATCH, vocab_size) and out.dtype == jnp.float32
    assert jnp.allclose(out, ref, atol=2e-4, rtol=2e-4), "mismatch vs JAX reference"

    print("KERNEL_OK")
</pallas_src>

<mosaic_0001>
module attributes {stable_mosaic.version = 11 : i64} {
  func.func @ngram_kernel(%arg0: i32, %arg1: memref<2x8x1xi32, #tpu.memory_space<vmem>>, %arg2: memref<256x128xf32, #tpu.memory_space<vmem>>, %arg3: memref<1x128xf32, #tpu.memory_space<vmem>>, %arg4: memref<128x128xf32, #tpu.memory_space<vmem>>, %arg5: memref<1x128xf32, #tpu.memory_space<vmem>>, %arg6: memref<8x128xf32, #tpu.memory_space<vmem>>) attributes {dimension_semantics = [#tpu.dimension_semantics<parallel>], iteration_bounds = array<i64: 1>, scalar_prefetch = 0 : i64, scratch_operands = 0 : i64, tpu.core_type = #tpu.core_type<tc>, window_params = [{transform_indices = @transform_0, window_bounds = array<i64: 2, 8, 1>}, {pipeline_mode = #tpu.pipeline_mode<synchronous>, transform_indices = @transform_1, window_bounds = array<i64: 256, 128>}, {pipeline_mode = #tpu.pipeline_mode<synchronous>, transform_indices = @transform_2, window_bounds = array<i64: 1, 128>}, {pipeline_mode = #tpu.pipeline_mode<synchronous>, transform_indices = @transform_3, window_bounds = array<i64: 128, 128>}, {pipeline_mode = #tpu.pipeline_mode<synchronous>, transform_indices = @transform_4, window_bounds = array<i64: 1, 128>}, {transform_indices = @transform_5, window_bounds = array<i64: 8, 128>}]} {
    %0 = tpu.iota {dimensions = array<i32: 1>} : vector<8x256xi32>
    %cst = arith.constant 0.000000e+00 : f32
    %1 = vector.broadcast %cst : f32 to vector<8x256xf32>
    %c0 = arith.constant 0 : index
    %c0_0 = arith.constant 0 : index
    %c0_1 = arith.constant 0 : index
    %2 = vector.load %arg1[%c0, %c0_0, %c0_1] : memref<2x8x1xi32, #tpu.memory_space<vmem>>, vector<1x8x1xi32>
    %3 = vector.shape_cast %2 : vector<1x8x1xi32> to vector<8x1xi32>
    %4 = vector.broadcast %3 : vector<8x1xi32> to vector<8x256xi32>
    %5 = arith.cmpi eq, %0, %4 : vector<8x256xi32>
    %6 = arith.extui %5 : vector<8x256xi1> to vector<8x256xi32>
    %7 = arith.sitofp %6 : vector<8x256xi32> to vector<8x256xf32>
    %8 = arith.addf %1, %7 : vector<8x256xf32>
    %c1 = arith.constant 1 : index
    %c0_2 = arith.constant 0 : index
    %c0_3 = arith.constant 0 : index
    %9 = vector.load %arg1[%c1, %c0_2, %c0_3] : memref<2x8x1xi32, #tpu.memory_space<vmem>>, vector<1x8x1xi32>
    %10 = vector.shape_cast %9 : vector<1x8x1xi32> to vector<8x1xi32>
    %11 = vector.broadcast %10 : vector<8x1xi32> to vector<8x256xi32>
    %12 = arith.cmpi eq, %0, %11 : vector<8x256xi32>
    %13 = arith.extui %12 : vector<8x256xi1> to vector<8x256xi32>
    %14 = arith.sitofp %13 : vector<8x256xi32> to vector<8x256xf32>
    %15 = arith.addf %8, %14 : vector<8x256xf32>
    %c0_4 = arith.constant 0 : index
    %c0_5 = arith.constant 0 : index
    %16 = vector.load %arg2[%c0_4, %c0_5] : memref<256x128xf32, #tpu.memory_space<vmem>>, vector<256x128xf32>
    %cst_6 = arith.constant dense<0.000000e+00> : vector<8x128xf32>
    %17 = tpu.matmul %15, %16, %cst_6 {dimension_numbers = #tpu.dot_dimension_numbers<[1], [0], [0], [1], [0, 0, 1, 1], [], []>} : vector<8x256xf32>, vector<256x128xf32>, vector<8x128xf32> -> vector<8x128xf32>
    %c0_7 = arith.constant 0 : index
    %c0_8 = arith.constant 0 : index
    %18 = vector.load %arg3[%c0_7, %c0_8] : memref<1x128xf32, #tpu.memory_space<vmem>>, vector<1x128xf32>
    %19 = vector.broadcast %18 : vector<1x128xf32> to vector<8x128xf32>
    %20 = arith.addf %17, %19 : vector<8x128xf32>
    %cst_9 = arith.constant 0.000000e+00 : f32
    %21 = vector.broadcast %cst_9 : f32 to vector<8x128xf32>
    %22 = arith.maximumf %20, %21 : vector<8x128xf32>
    %c0_10 = arith.constant 0 : index
    %c0_11 = arith.constant 0 : index
    %23 = vector.load %arg4[%c0_10, %c0_11] : memref<128x128xf32, #tpu.memory_space<vmem>>, vector<128x128xf32>
    %cst_12 = arith.constant dense<0.000000e+00> : vector<8x128xf32>
    %24 = tpu.matmul %22, %23, %cst_12 {dimension_numbers = #tpu.dot_dimension_numbers<[1], [0], [0], [1], [0, 0, 1, 1], [], []>} : vector<8x128xf32>, vector<128x128xf32>, vector<8x128xf32> -> vector<8x128xf32>
    %c0_13 = arith.constant 0 : index
    %c0_14 = arith.constant 0 : index
    %25 = vector.load %arg5[%c0_13, %c0_14] : memref<1x128xf32, #tpu.memory_space<vmem>>, vector<1x128xf32>
    %26 = vector.broadcast %25 : vector<1x128xf32> to vector<8x128xf32>
    %27 = arith.addf %24, %26 : vector<8x128xf32>
    %cst_15 = arith.constant dense<0xFF800000> : vector<8xf32>
    %28 = vector.multi_reduction <maximumf>, %27, %cst_15 [1] : vector<8x128xf32> to vector<8xf32>
    %29 = vector.shape_cast %28 : vector<8xf32> to vector<8x1xf32>
    %30 = vector.broadcast %29 : vector<8x1xf32> to vector<8x128xf32>
    %31 = arith.subf %27, %30 : vector<8x128xf32>
    %32 = math.exp %31 : vector<8x128xf32>
    %cst_16 = arith.constant dense<0.000000e+00> : vector<8xf32>
    %33 = vector.multi_reduction <add>, %32, %cst_16 [1] : vector<8x128xf32> to vector<8xf32>
    %34 = vector.shape_cast %33 : vector<8xf32> to vector<8x1xf32>
    %35 = math.log %34 : vector<8x1xf32>
    %36 = vector.broadcast %35 : vector<8x1xf32> to vector<8x128xf32>
    %37 = arith.subf %31, %36 : vector<8x128xf32>
    %c0_17 = arith.constant 0 : index
    %c0_18 = arith.constant 0 : index
    %38 = vector.load %arg6[%c0_17, %c0_18] : memref<8x128xf32, #tpu.memory_space<vmem>>, vector<8x128xf32>
    tpu.vector_store %arg6[%c0_17, %c0_18], %37 {strides = array<i32>} : memref<8x128xf32, #tpu.memory_space<vmem>>, vector<8x128xf32>,
    return
  }
  func.func @transform_0(%arg0: i32) -> (i32, i32, i32) {
    %c0_i32 = arith.constant 0 : i32
    %c0_i32_0 = arith.constant 0 : i32
    %c0_i32_1 = arith.constant 0 : i32
    return %c0_i32, %arg0, %c0_i32_0 : i32, i32, i32
  }
  func.func @transform_1(%arg0: i32) -> (i32, i32) {
    %c0_i32 = arith.constant 0 : i32
    %c0_i32_0 = arith.constant 0 : i32
    %c0_i32_1 = arith.constant 0 : i32
    return %c0_i32, %c0_i32_0 : i32, i32
  }
  func.func @transform_2(%arg0: i32) -> (i32, i32) {
    %c0_i32 = arith.constant 0 : i32
    %c0_i32_0 = arith.constant 0 : i32
    %c0_i32_1 = arith.constant 0 : i32
    return %c0_i32, %c0_i32_0 : i32, i32
  }
  func.func @transform_3(%arg0: i32) -> (i32, i32) {
    %c0_i32 = arith.constant 0 : i32
    %c0_i32_0 = arith.constant 0 : i32
    %c0_i32_1 = arith.constant 0 : i32
    return %c0_i32, %c0_i32_0 : i32, i32
  }
  func.func @transform_4(%arg0: i32) -> (i32, i32) {
    %c0_i32 = arith.constant 0 : i32
    %c0_i32_0 = arith.constant 0 : i32
    %c0_i32_1 = arith.constant 0 : i32
    return %c0_i32, %c0_i32_0 : i32, i32
  }
  func.func @transform_5(%arg0: i32) -> (i32, i32) {
    %c0_i32 = arith.constant 0 : i32
    %c0_i32_0 = arith.constant 0 : i32
    return %arg0, %c0_i32 : i32, i32
  }
}

</mosaic_0001>

<bundles_post_ra>
// kernel: tpu_custom_call.1
= control target key start
LH: loop header
LB: loop body
LE: loop exit
PB: predicated region body
PF: predicated region fallthrough
CT: control target
= control target key end

     0   :  { %10 = vsyncpa [#allocation3], 0  ;;  %s382_s0 = inlined_call_operand.vmem [shape: s32[2,8,1], index: 0, kind: input, shape index: {}]   ;;  %s383_s1 = inlined_call_operand.hbm [shape: f32[256,128], index: 1, kind: input, shape index: {}]   ;;  %s384_s2 = inlined_call_operand.vmem [shape: f32[1,128], index: 2, kind: input, shape index: {}]   ;;  %s385_s3 = inlined_call_operand.hbm [shape: f32[128,128], index: 3, kind: input, shape index: {}]   ;;  %s386_s4 = inlined_call_operand.vmem [shape: f32[1,128], index: 4, kind: input, shape index: {}]   ;;  %s387_s5 = inlined_call_operand.hbm [shape: f32[8,128], index: 5, kind: output, shape index: {}]  }
   0x1   :  { %11 = vsyncpa [#allocation6], 0 }
   0x2   :  { %12 = vsyncpa [#allocation4], 0  ;;  %s19_s20 = sshll.u32 %s383_s1, 4  ;;  %s324_s21 = smov [#allocation2]   ;;  %s20_s20 = int_to_ptr.hbm [resolvable:$true] %s19_s20 }
   0x3   :  { %s21_s22 = sshll.u32 %s324_s21, 4  ;;  %s34_s25 = sshll.u32 %s385_s3, 4  ;;  %s22_s22 = int_to_ptr.vmem [resolvable:$true] %s21_s22  ;;  %s35_s25 = int_to_ptr.hbm [resolvable:$true] %s34_s25 }
   0x4   :  { %s325_s26 = smov 128   ;;  %s326_s27 = smov 8  }
   0x5   :  { %27 = dma.hbm_to_vmem [thread:$0]  %s20_s20, 4096, %s22_s22, [#allocation3], %s325_s26, %s325_s26, %s326_s27  }
   0x6   :  { %s327_s28 = smov [#allocation5]  }
   0x7   :  { %s36_s29 = sshll.u32 %s327_s28, 4  ;;  %s37_s29 = int_to_ptr.vmem [resolvable:$true] %s36_s29 }
   0x8   :  { %42 = dma.hbm_to_vmem [thread:$0]  %s35_s25, 2048, %s37_s29, [#allocation6], %s325_s26, %s325_s26, %s326_s27  }
   0x9   :  { %318 = dma.done.wait [#allocation3], 4096  }
   0xa   :  { %319 = vsyncadd [#allocation3], 4294963200 }
   0xb   :  { %320 = dma.done.wait [#allocation6], 2048  }
   0xc   :  { %321 = vsyncadd [#allocation6], 4294965248  ;;  %v328_v0 = vmov 0   ;;  %v56_v1 = vld [vmem:[%s382_s0] sm:$0xff]  ;;  %v96_v2 = vld [vmem:[#allocation2 + $0x78] sm:$0xff]  ;;  %v53_v43 = vlaneseq  ;;  %v329_v52 = vmov 0.0  }
   0xd   :  { %239 = vset.pattern.permute.xlu0 %v328_v0  ;;  %117 = vmatpush.msra.mxu0 %v96_v2  ;;  %v112_v3 = vld [vmem:[#allocation2 + $0xf8] sm:$0xff]  ;;  %v95_v4 = vld [vmem:[#allocation2 + $0x70] sm:$0xff]  ;;  %v94_v6 = vld [vmem:[#allocation2 + $0x68] sm:$0xff]  ;;  %s216_s13 = sshll.u32 %s387_s5, 4  ;;  %s217_s13 = int_to_ptr.hbm [resolvable:$true] %s216_s13 }
   0xe   :  { %58 = vperm.xlu0 %239, %v56_v1   ;;  %v111_v5 = vld [vmem:[#allocation2 + $0xf0] sm:$0xff]  ;;  %137 = vmatpush.msra.mxu1 %v112_v3  ;;  %v110_v7 = vld [vmem:[#allocation2 + $0xe8] sm:$0xff]  ;;  %v93_v8 = vld [vmem:[#allocation2 + $0x60] sm:$0xff]  ;;  %v54_v46 = vand.u32 127, %v53_v43 }
   0xf   :  { %118 = vmatpush.msra.mxu0 %v95_v4  ;;  %v109_v9 = vld [vmem:[#allocation2 + $0xe0] sm:$0xff]  ;;  %v229_v10 = vld [vmem:[%s382_s0 + $0x8] sm:$0xff]  ;;  %v92_v11 = vld [vmem:[#allocation2 + $0x58] sm:$0xff] }
  0x10   :  { %138 = vmatpush.msra.mxu1 %v111_v5  ;;  %v108_v12 = vld [vmem:[#allocation2 + $0xd8] sm:$0xff]  ;;  %v91_v13 = vld [vmem:[#allocation2 + $0x50] sm:$0xff]  ;;  %v90_v15 = vld [vmem:[#allocation2 + $0x48] sm:$0xff]  ;;  %v55_v50 = vadd.s32 128, %v54_v46 }
  0x11   :  { %119 = vmatpush.msra.mxu0 %v94_v6  ;;  %v107_v14 = vld [vmem:[#allocation2 + $0xd0] sm:$0xff]  ;;  %v106_v16 = vld [vmem:[#allocation2 + $0xc8] sm:$0xff]  ;;  %v89_v17 = vld [vmem:[#allocation2 + $0x40] sm:$0xff] }
  0x12   :  { %139 = vmatpush.msra.mxu1 %v110_v7  ;;  %v105_v18 = vld [vmem:[#allocation2 + $0xc0] sm:$0xff]  ;;  %v88_v19 = vld [vmem:[#allocation2 + $0x38] sm:$0xff]  ;;  %v87_v21 = vld [vmem:[#allocation2 + $0x30] sm:$0xff] }
  0x13   :  { %120 = vmatpush.msra.mxu0 %v93_v8  ;;  %v104_v20 = vld [vmem:[#allocation2 + $0xb8] sm:$0xff]  ;;  %v103_v22 = vld [vmem:[#allocation2 + $0xb0] sm:$0xff]  ;;  %v86_v23 = vld [vmem:[#allocation2 + $0x28] sm:$0xff] }
  0x14   :  { %140 = vmatpush.msra.mxu1 %v109_v9  ;;  %v102_v24 = vld [vmem:[#allocation2 + $0xa8] sm:$0xff]  ;;  %v85_v25 = vld [vmem:[#allocation2 + $0x20] sm:$0xff]  ;;  %v84_v27 = vld [vmem:[#allocation2 + $0x18] sm:$0xff] }
  0x15   :  { %121 = vmatpush.msra.mxu0 %v92_v11  ;;  %v101_v26 = vld [vmem:[#allocation2 + $0xa0] sm:$0xff]  ;;  %v100_v28 = vld [vmem:[#allocation2 + $0x98] sm:$0xff]  ;;  %v83_v29 = vld [vmem:[#allocation2 + $0x10] sm:$0xff] }
  0x16   :  { %71 = vperm.xlu0 %239, %v229_v10   ;;  %141 = vmatpush.msra.mxu1 %v108_v12  ;;  %v99_v30 = vld [vmem:[#allocation2 + $0x90] sm:$0xff]  ;;  %v82_v31 = vld [vmem:[#allocation2 + $0x8] sm:$0xff]  ;;  %v81_v33 = vld [vmem:[#allocation2] sm:$0xff] }
  0x17   :  { %122 = vmatpush.msra.mxu0 %v91_v13  ;;  %v98_v32 = vld [vmem:[#allocation2 + $0x88] sm:$0xff]  ;;  %v97_v34 = vld [vmem:[#allocation2 + $0x80] sm:$0xff]  ;;  %v173_v35 = vld [vmem:[#allocation5 + $0x78] sm:$0xff] }
  0x18   :  { %142 = vmatpush.msra.mxu1 %v107_v14  ;;  %v172_v36 = vld [vmem:[#allocation5 + $0x70] sm:$0xff]  ;;  %178 = vmatpush.msra.mxu2 %v173_v35  ;;  %v171_v37 = vld [vmem:[#allocation5 + $0x68] sm:$0xff]  ;;  %v170_v38 = vld [vmem:[#allocation5 + $0x60] sm:$0xff] }
  0x19   :  { %123 = vmatpush.msra.mxu0 %v90_v15  ;;  %v169_v39 = vld [vmem:[#allocation5 + $0x58] sm:$0xff]  ;;  %v168_v40 = vld [vmem:[#allocation5 + $0x50] sm:$0xff]  ;;  %v167_v41 = vld [vmem:[#allocation5 + $0x48] sm:$0xff] }
  0x1a   :  { %143 = vmatpush.msra.mxu1 %v106_v16  ;;  %179 = vmatpush.msra.mxu2 %v172_v36  ;;  %v166_v42 = vld [vmem:[#allocation5 + $0x40] sm:$0xff]  ;;  %v165_v44 = vld [vmem:[#allocation5 + $0x38] sm:$0xff]  ;;  %v164_v45 = vld [vmem:[#allocation5 + $0x30] sm:$0xff] }
  0x1b   :  { %124 = vmatpush.msra.mxu0 %v89_v17  ;;  %v163_v47 = vld [vmem:[#allocation5 + $0x28] sm:$0xff]  ;;  %v162_v49 = vld [vmem:[#allocation5 + $0x20] sm:$0xff]  ;;  %v161_v59 = vld [vmem:[#allocation5 + $0x18] sm:$0xff] }
  0x1c   :  { %144 = vmatpush.msra.mxu1 %v105_v18  ;;  %180 = vmatpush.msra.mxu2 %v171_v37  ;;  %v160_v60 = vld [vmem:[#allocation5 + $0x10] sm:$0xff]  ;;  %v159_v61 = vld [vmem:[#allocation5 + $0x8] sm:$0xff]  ;;  %v158_v62 = vld [vmem:[#allocation5] sm:$0xff] }
  0x1d   :  { %125 = vmatpush.msra.mxu0 %v88_v19  ;;  %v240_v63 = vld [vmem:[%s384_s2] ss:$0 sm:$0xff]  ;;  %s330_s2 = smov [#allocation7]  }
  0x1e   :  { %145 = vmatpush.msra.mxu1 %v104_v20  ;;  %181 = vmatpush.msra.mxu2 %v170_v38  ;;  %v241_v5 = vld [vmem:[%s386_s4] ss:$0 sm:$0xff]  ;;  %s214_s10 = sshll.u32 %s330_s2, 4  ;;  %s215_s10 = int_to_ptr.vmem [resolvable:$true] %s214_s10 }
  0x1f   :  { %126 = vmatpush.msra.mxu0 %v87_v21 }
  0x20   :  { %146 = vmatpush.msra.mxu1 %v103_v22  ;;  %182 = vmatpush.msra.mxu2 %v169_v39 }
  0x21   :  { %127 = vmatpush.msra.mxu0 %v86_v23 }
  0x22   :  { %147 = vmatpush.msra.mxu1 %v102_v24  ;;  %183 = vmatpush.msra.mxu2 %v168_v40 }
  0x23   :  { %128 = vmatpush.msra.mxu0 %v85_v25 }
  0x24   :  { %148 = vmatpush.msra.mxu1 %v101_v26  ;;  %184 = vmatpush.msra.mxu2 %v167_v41 }
  0x25   :  { %129 = vmatpush.msra.mxu0 %v84_v27 }
  0x26   :  { %149 = vmatpush.msra.mxu1 %v100_v28  ;;  %185 = vmatpush.msra.mxu2 %v166_v42 }
  0x27   :  { %130 = vmatpush.msra.mxu0 %v83_v29 }
  0x28   :  { %150 = vmatpush.msra.mxu1 %v99_v30  ;;  %186 = vmatpush.msra.mxu2 %v165_v44 }
  0x29   :  { %131 = vmatpush.msra.mxu0 %v82_v31 }
  0x2a   :  { %151 = vmatpush.msra.mxu1 %v98_v32  ;;  %187 = vmatpush.msra.mxu2 %v164_v45 }
  0x2b   :  { %132 = vmatpush.msra.mxu0 %v81_v33 }
  0x2c   :  { %152 = vmatpush.msra.mxu1 %v97_v34  ;;  %188 = vmatpush.msra.mxu2 %v163_v47 }
  0x2e   :  { %189 = vmatpush.msra.mxu2 %v162_v49 }
  0x30   :  { %190 = vmatpush.msra.mxu2 %v161_v59 }
  0x32   :  { %191 = vmatpush.msra.mxu2 %v160_v60 }
  0x34   :  { %192 = vmatpush.msra.mxu2 %v159_v61 }
  0x36   :  { %193 = vmatpush.msra.mxu2 %v158_v62 }
  0x80   :  { %v59_v48 = vpop.permute.xlu0 %58 }
  0x81   :  { %vm60_vm0 = vcmp.eq.s32.totalorder %v54_v46, %v59_v48  ;;  %vm61_vm1 = vcmp.eq.s32.totalorder %v55_v50, %v59_v48 }
  0x82   :  { %v227_v55 = vsel %vm60_vm0, 1.0, %v329_v52  ;;  %v228_v56 = vsel %vm61_vm1, 1.0, %v329_v52 }
  0x88   :  { %v72_v51 = vpop.permute.xlu0 %71 }
  0x89   :  { %vm73_vm2 = vcmp.eq.s32.totalorder %v54_v46, %v72_v51  ;;  %vm74_vm3 = vcmp.eq.s32.totalorder %v55_v50, %v72_v51 }
  0x8a   :  { %v230_v53 = vsel %vm73_vm2, 1.0, %v329_v52  ;;  %v231_v54 = vsel %vm74_vm3, 1.0, %v329_v52 }
  0x8b   :  { %v79_v57 = vadd.f32 %v230_v53, %v227_v55  ;;  %v80_v58 = vadd.f32 %v231_v54, %v228_v56 }
  0x8d   :  { %133 = vmatmul.f32.vlgmr.msra.gmra.mxu0 %v79_v57  ;;  %153 = vmatmul.f32.vlgmr.msra.gmra.mxu1 %v80_v58 }
 0x10a   :  { %v134_v0 = vpop.f32.mrf.mxu0  ;;  %v154_v2 = vpop.f32.mrf.mxu1 }
 0x10b   :  { %v135_v1 = vadd.f32 %v240_v63, %v134_v0 }
 0x10d   :  { %v155_v3 = vadd.f32 %v154_v2, %v135_v1 }
 0x10f   :  { %v157_v4 = vmax.f32 %v155_v3, 0.0 }
 0x111   :  { %194 = vmatmul.f32.vlgmr.msra.gmra.mxu2 %v157_v4 }
 0x194   :  { %v195_v6 = vpop.f32.mrf.mxu2 }
 0x195   :  { %v196_v7 = vadd.f32 %v241_v5, %v195_v6 }
 0x197   :  { %198 = vmax.xlane.f32.xlu1 %v196_v7 }
 0x20a   :  { %v199_v8 = vpop.xlane.xlu1 %198 }
 0x20b   :  { %v200_v9 = vsub.f32 %v196_v7, %v199_v8 }
 0x20d   :  { %v201_v10 = vmul.f32 1.442695, %v200_v9 }
 0x20f   :  { %242 = vpow2.f32 %v201_v10 }
 0x215   :  { %v243_v11 = vpop.eup %242 }
 0x216   :  { %203 = vadd.xlane.f32.xlu1 %v243_v11 }
 0x289   :  { %v204_v12 = vpop.xlane.xlu1 %203 }
 0x28a   :  { %244 = vlog2.f32 %v204_v12 }
 0x290   :  { %v245_v13 = vpop.eup %244 }
 0x291   :  { %v206_v14 = vmul.f32 0.6931472, %v245_v13 }
 0x293   :  { %v207_v15 = vsub.f32 %v200_v9, %v206_v14 }
 0x295   :  { %208 = vst [vmem:[#allocation7] sm:$0xff] %v207_v15 }
 0x296   :  { %219 = dma.vmem_to_hbm [thread:$0]  %s215_s10, 128, %s217_s13, [#allocation4]  }
 0x297   :  { %322 = dma.done.wait [#allocation4], 128  }
 0x298   :  { %323 = vsyncadd [#allocation4], 4294967168 }
 0x299   :  { %224 = vsyncpa [#allocation3], 1 }
 0x29a   :  { %225 = vsyncpa [#allocation6], 1 }
 0x29b   :  { %226 = vsyncpa [#allocation4], 1 }

</bundles_post_ra>
